<compile_context>
chip_gen: v7x
topology: tpu7x:2x2x1
jax: 0.10.0
libtpu: 0.0.40
codegen_flags: <defaults>
</compile_context>

<pallas_src>
import functools
import math

import jax
import jax.numpy as jnp
from jax import lax
from jax.experimental import pallas as pl
from jax.experimental.pallas import tpu as pltpu


# ----------------------------------------------------------------------------
# Tile pickers / VMEM-limit helper
# ----------------------------------------------------------------------------
def _row_tile(n, target):
    """Sublane-axis tile. Returns (tile, padded_n); pads rather than untiling."""
    if n <= target:
        return n, n
    t = (target // 8) * 8
    while t >= 8 and n % t:
        t -= 8
    if t >= 8:
        return t, n
    t = (target // 8) * 8                      # no divisor: pad rows up
    return t, pl.cdiv(n, t) * t


def _col_tile(n, target):
    """Lane-axis tile dividing n (multiple of 128), else the full dim."""
    if n <= target or n % 128:
        return n
    t = (target // 128) * 128
    while t >= 128 and n % t:
        t -= 128
    return t if t >= 128 else n


def _seq_tile(n, target):
    """Key-sequence tile: multiple-of-8 divisor of n, else full n (no pad)."""
    if n <= target:
        return n
    t = (target // 8) * 8
    while t >= 8 and n % t:
        t -= 8
    return t if t >= 8 else n


def _vmem_limit(needed_bytes):
    """Explicit scoped-VMEM limit: >= 32 MiB, <= 48 MiB (v7x has 64 MiB phys)."""
    return int(min(48 * 2**20, max(32 * 2**20, 2 * needed_bytes)))


# ----------------------------------------------------------------------------
# Kernel 1: dense / linear layer  y = x @ W_t + b
#   x tile (tm, d_in) f32 -> bf16; W_t block (d_in, tn) stored bf16; f32 acc.
# ----------------------------------------------------------------------------
def linear_kernel(x_ref, wt_ref, b_ref, o_ref):
    acc = jnp.dot(x_ref[...].astype(jnp.bfloat16), wt_ref[...],
                  preferred_element_type=jnp.float32)
    o_ref[...] = (acc + b_ref[...]).astype(o_ref.dtype)


def pallas_linear(x, w_t, bias, *, row_target=512, col_target=512):
    """x: (N, d_in) f32; w_t: (d_in, d_out) bf16 (pre-transposed); bias: (d_out,) f32."""
    n, d_in = x.shape
    d_out = w_t.shape[1]
    tm, n_pad = _row_tile(n, row_target)
    tn = _col_tile(d_out, col_target)
    xp = jnp.pad(x, ((0, n_pad - n), (0, 0))) if n_pad != n else x
    b2 = bias.reshape(1, d_out)

    cost = pl.CostEstimate(
        flops=int(2 * n * d_in * d_out),
        transcendentals=0,
        bytes_accessed=int(4 * n * d_in + 2 * d_in * d_out + 4 * d_out + 4 * n * d_out),
    )
    needed = 2 * (tm * d_in * 4 + d_in * tn * 2 + tn * 4 + tm * tn * 4)

    out = pl.pallas_call(
        linear_kernel,
        out_shape=jax.ShapeDtypeStruct((n_pad, d_out), x.dtype),
        grid=(n_pad // tm, d_out // tn),
        in_specs=[
            pl.BlockSpec((tm, d_in), lambda i, j: (i, 0)),
            pl.BlockSpec((d_in, tn), lambda i, j: (0, j)),
            pl.BlockSpec((1, tn), lambda i, j: (0, j)),
        ],
        out_specs=pl.BlockSpec((tm, tn), lambda i, j: (i, j)),
        compiler_params=pltpu.CompilerParams(
            dimension_semantics=("parallel", "parallel"),
            vmem_limit_bytes=_vmem_limit(needed)),
        cost_estimate=cost,
    )(xp, w_t, b2)
    return out[:n] if n_pad != n else out


# ----------------------------------------------------------------------------
# Kernel 1b: fused QKV projection (self-attention fast path)
#   one x tile (read from HBM once) reused against three (d_in, tn) weight
#   blocks; three lane-dense outputs.
# ----------------------------------------------------------------------------
def qkv_proj_kernel(x_ref, wq_ref, wk_ref, wv_ref, bq_ref, bk_ref, bv_ref,
                    q_ref, k_ref, v_ref):
    x = x_ref[...].astype(jnp.bfloat16)
    for w_ref, b_ref, o_ref in ((wq_ref, bq_ref, q_ref),
                                (wk_ref, bk_ref, k_ref),
                                (wv_ref, bv_ref, v_ref)):
        acc = jnp.dot(x, w_ref[...], preferred_element_type=jnp.float32)
        o_ref[...] = (acc + b_ref[...]).astype(o_ref.dtype)


def pallas_qkv_proj(x, wq_t, wk_t, wv_t, bq, bk, bv, *,
                    row_target=512, col_target=512):
    """x: (N, d_model) f32; weights (d_model, d_model) bf16; biases (d_model,) f32."""
    n, d_model = x.shape
    tm, n_pad = _row_tile(n, row_target)
    tn = _col_tile(d_model, col_target)
    xp = jnp.pad(x, ((0, n_pad - n), (0, 0))) if n_pad != n else x
    bq2, bk2, bv2 = (b.reshape(1, d_model) for b in (bq, bk, bv))

    cost = pl.CostEstimate(
        flops=int(2 * n * d_model * 3 * d_model),
        transcendentals=0,
        bytes_accessed=int(4 * n * d_model + 3 * 2 * d_model * d_model
                           + 3 * 4 * d_model + 3 * 4 * n * d_model),
    )
    needed = 2 * (tm * d_model * 4 + 3 * d_model * tn * 2 + 3 * tn * 4
                  + 3 * tm * tn * 4)

    w_spec = pl.BlockSpec((d_model, tn), lambda i, j: (0, j))
    b_spec = pl.BlockSpec((1, tn), lambda i, j: (0, j))
    o_spec = pl.BlockSpec((tm, tn), lambda i, j: (i, j))
    out_sds = jax.ShapeDtypeStruct((n_pad, d_model), x.dtype)

    q, k, v = pl.pallas_call(
        qkv_proj_kernel,
        out_shape=(out_sds, out_sds, out_sds),
        grid=(n_pad // tm, d_model // tn),
        in_specs=[
            pl.BlockSpec((tm, d_model), lambda i, j: (i, 0)),
            w_spec, w_spec, w_spec, b_spec, b_spec, b_spec,
        ],
        out_specs=[o_spec, o_spec, o_spec],
        compiler_params=pltpu.CompilerParams(
            dimension_semantics=("parallel", "parallel"),
            vmem_limit_bytes=_vmem_limit(needed)),
        cost_estimate=cost,
    )(xp, wq_t, wk_t, wv_t, bq2, bk2, bv2)
    if n_pad != n:
        q, k, v = q[:n], k[:n], v[:n]
    return q, k, v


# ----------------------------------------------------------------------------
# Kernel 2: flash-style scaled-dot-product attention.
#   grid = (B*nhead, Sq tiles, Sk tiles); online softmax in VMEM scratch;
#   bf16 MXU operands, f32 softmax / accumulation; per-head direct stores.
# ----------------------------------------------------------------------------
def attention_kernel(q_ref, k_ref, v_ref, o_ref, m_sc, l_sc, acc_sc, *, scale):
    ki = pl.program_id(2)

    @pl.when(ki == 0)
    def _():
        m_sc[...] = jnp.full_like(m_sc, -jnp.inf)
        l_sc[...] = jnp.zeros_like(l_sc)
        acc_sc[...] = jnp.zeros_like(acc_sc)

    # Scale Q (tq*d_k mults, not tq*tk), then feed the MXU bf16 operands.
    q = (q_ref[...] * scale).astype(jnp.bfloat16)
    k = k_ref[...].astype(jnp.bfloat16)
    s = lax.dot_general(q, k, (((1,), (1,)), ((), ())),
                        preferred_element_type=jnp.float32)          # (tq, tk)

    # Online softmax update (all f32).
    m_prev = m_sc[...]
    m_new = jnp.maximum(m_prev, jnp.max(s, axis=-1, keepdims=True))
    alpha = jnp.exp(m_prev - m_new)
    p = jnp.exp(s - m_new)
    l_sc[...] = alpha * l_sc[...] + jnp.sum(p, axis=-1, keepdims=True)

    pv = lax.dot_general(p.astype(jnp.bfloat16), v_ref[...].astype(jnp.bfloat16),
                         (((1,), (0,)), ((), ())),
                         preferred_element_type=jnp.float32)          # (tq, d_k)
    acc_sc[...] = alpha * acc_sc[...] + pv
    m_sc[...] = m_new

    @pl.when(ki == pl.num_programs(2) - 1)
    def _():
        o_ref[...] = (acc_sc[...] / l_sc[...]).astype(o_ref.dtype)


def pallas_attention(q, k, v, nhead, *, q_target=256, k_target=512):
    """q: (B, Sq, d_model); k, v: (B, Sk, d_model)  ->  (B, Sq, d_model)."""
    B, Sq, d_model = q.shape
    Sk = k.shape[1]
    d_k = d_model // nhead
    BH = B * nhead

    # Head split, matching PyTorch's .view(B,S,H,d_k).transpose(1,2).
    def split_heads(t):
        b, s, _ = t.shape
        return t.reshape(b, s, nhead, d_k).transpose(0, 2, 1, 3).reshape(b * nhead, s, d_k)

    qh, kh, vh = split_heads(q), split_heads(k), split_heads(v)

    tq, sq_pad = _row_tile(Sq, q_target)
    tk = _seq_tile(Sk, k_target)
    if sq_pad != Sq:
        qh = jnp.pad(qh, ((0, 0), (0, sq_pad - Sq), (0, 0)))

    kernel = functools.partial(attention_kernel, scale=1.0 / math.sqrt(d_k))
    cost = pl.CostEstimate(
        flops=int(4 * BH * Sq * Sk * d_k),
        transcendentals=int(BH * Sq * Sk),
        bytes_accessed=int(4 * (2 * B * Sq * d_model + 2 * B * Sk * d_model)),
    )
    needed = (2 * (tq * d_k * 4 + 2 * tk * d_k * 4 + tq * d_k * 4)
              + (2 * tq + tq * d_k) * 4 + 4 * tq * tk * 4)

    out = pl.pallas_call(
        kernel,
        out_shape=jax.ShapeDtypeStruct((BH, sq_pad, d_k), q.dtype),
        grid=(BH, sq_pad // tq, Sk // tk),
        in_specs=[
            pl.BlockSpec((pl.Squeezed(), tq, d_k), lambda b, i, j: (b, i, 0)),
            pl.BlockSpec((pl.Squeezed(), tk, d_k), lambda b, i, j: (b, j, 0)),
            pl.BlockSpec((pl.Squeezed(), tk, d_k), lambda b, i, j: (b, j, 0)),
        ],
        out_specs=pl.BlockSpec((pl.Squeezed(), tq, d_k), lambda b, i, j: (b, i, 0)),
        scratch_shapes=[
            pltpu.VMEM((tq, 1), jnp.float32),       # running max  m
            pltpu.VMEM((tq, 1), jnp.float32),       # running sum  l
            pltpu.VMEM((tq, d_k), jnp.float32),     # running P@V  acc
        ],
        compiler_params=pltpu.CompilerParams(
            dimension_semantics=("parallel", "parallel", "arbitrary"),
            vmem_limit_bytes=_vmem_limit(needed)),
        cost_estimate=cost,
    )(qh, kh, vh)

    if sq_pad != Sq:
        out = out[:, :Sq, :]
    # Merge heads back, matching .transpose(1,2).contiguous().view(B,Sq,d_model).
    return out.reshape(B, nhead, Sq, d_k).transpose(0, 2, 1, 3).reshape(B, Sq, d_model)


# ----------------------------------------------------------------------------
# MultiHeadAttention forward (glue in plain JAX, hot path in Pallas)
# ----------------------------------------------------------------------------
def multi_head_attention(prepared, query, key, value, nhead, *, self_attention=None):
    """query: (B, Sq, d_model); key/value: (B, Sk, d_model) -> (B, Sq, d_model)."""
    B, Sq, d_model = query.shape
    Sk = key.shape[1]
    if self_attention is None:          # identity only as a default hint
        self_attention = (query is key) and (key is value)

    if self_attention:
        # Fused QKV projection: x read from HBM once.
        q_p, k_p, v_p = pallas_qkv_proj(
            query.reshape(B * Sq, d_model),
            prepared["wq_t"], prepared["wk_t"], prepared["wv_t"],
            prepared["bq"], prepared["bk"], prepared["bv"])
        q_p = q_p.reshape(B, Sq, d_model)
        k_p = k_p.reshape(B, Sq, d_model)
        v_p = v_p.reshape(B, Sq, d_model)
    else:
        q_p = pallas_linear(query.reshape(B * Sq, d_model),
                            prepared["wq_t"], prepared["bq"]).reshape(B, Sq, d_model)
        k_p = pallas_linear(key.reshape(B * Sk, d_model),
                            prepared["wk_t"], prepared["bk"]).reshape(B, Sk, d_model)
        v_p = pallas_linear(value.reshape(B * Sk, d_model),
                            prepared["wv_t"], prepared["bv"]).reshape(B, Sk, d_model)

    x = pallas_attention(q_p, k_p, v_p, nhead)                     # (B, Sq, d_model)
    out = pallas_linear(x.reshape(B * Sq, d_model), prepared["wo_t"], prepared["bo"])
    return out.reshape(B, Sq, d_model)


# ----------------------------------------------------------------------------
# Parameter init (PyTorch nn.Linear layout) + one-time prep (transpose + bf16)
# ----------------------------------------------------------------------------
def init_params(key, d_model):
    keys = jax.random.split(key, 8)
    bound = 1.0 / math.sqrt(d_model)

    def lin(kw, kb):
        w = jax.random.uniform(kw, (d_model, d_model), jnp.float32, -bound, bound)
        b = jax.random.uniform(kb, (d_model,), jnp.float32, -bound, bound)
        return w, b

    wq, bq = lin(keys[0], keys[1])
    wk, bk = lin(keys[2], keys[3])
    wv, bv = lin(keys[4], keys[5])
    wo, bo = lin(keys[6], keys[7])
    return dict(wq=wq, bq=bq, wk=wk, bk=bk, wv=wv, bv=bv, wo=wo, bo=bo)


def prepare_params(params):
    """One-time (d_out,d_in)->(d_in,d_out) transpose + bf16 cast of the weights."""
    return dict(
        wq_t=params["wq"].T.astype(jnp.bfloat16), bq=params["bq"],
        wk_t=params["wk"].T.astype(jnp.bfloat16), bk=params["bk"],
        wv_t=params["wv"].T.astype(jnp.bfloat16), bv=params["bv"],
        wo_t=params["wo"].T.astype(jnp.bfloat16), bo=params["bo"],
    )


if __name__ == "__main__":
    B, S, d_model, nhead = 2, 8, 32, 4

    root = jax.random.PRNGKey(0)
    kp, kx, kq, kk, kv = jax.random.split(root, 5)
    params = init_params(kp, d_model)
    prepared = prepare_params(params)

    # Self-attention input (fused-QKV path, explicitly flagged).
    x_in = jax.random.normal(kx, (B, S, d_model), jnp.float32)
    # Cross-attention inputs (separate-projection path).
    query = jax.random.normal(kq, (B, S, d_model), jnp.float32)
    key = jax.random.normal(kk, (B, S, d_model), jnp.float32)
    value = jax.random.normal(kv, (B, S, d_model), jnp.float32)

    out_self = multi_head_attention(prepared, x_in, x_in, x_in, nhead,
                                    self_attention=True)
    out_cross = multi_head_attention(prepared, query, key, value, nhead)
    jax.block_until_ready((out_self, out_cross))

    # Pure-JAX f32 reference (eval-mode, no dropout), PyTorch-layout params.
    def ref_forward(p, q_, k_, v_):
        d_k = d_model // nhead

        def proj(t, w, b):
            y = t @ w.T + b
            return y.reshape(t.shape[0], t.shape[1], nhead, d_k).transpose(0, 2, 1, 3)

        q = proj(q_, p["wq"], p["bq"])
        k = proj(k_, p["wk"], p["bk"])
        v = proj(v_, p["wv"], p["bv"])
        scores = jnp.einsum("bhqd,bhkd->bhqk", q, k) / math.sqrt(d_k)
        probs = jax.nn.softmax(scores, axis=-1)
        xo = jnp.einsum("bhqk,bhkd->bhqd", probs, v)
        xo = xo.transpose(0, 2, 1, 3).reshape(q_.shape[0], q_.shape[1], d_model)
        return xo @ p["wo"].T + p["bo"]

    ref_self = ref_forward(params, x_in, x_in, x_in)
    ref_cross = ref_forward(params, query, key, value)
    # Tolerance accounts for bf16 MXU operands (f32 accumulation / softmax).
    assert jnp.allclose(out_self, ref_self, atol=3e-2, rtol=3e-2), "self-attn mismatch"
    assert jnp.allclose(out_cross, ref_cross, atol=3e-2, rtol=3e-2), "cross-attn mismatch"

    print("KERNEL_OK")
</pallas_src>

<mosaic_0001>
module attributes {stable_mosaic.version = 11 : i64} {
  func.func @qkv_proj_kernel(%arg0: i32, %arg1: i32, %arg2: memref<16x32xf32, #tpu.memory_space<vmem>>, %arg3: memref<32x32xbf16, #tpu.memory_space<vmem>>, %arg4: memref<32x32xbf16, #tpu.memory_space<vmem>>, %arg5: memref<32x32xbf16, #tpu.memory_space<vmem>>, %arg6: memref<1x32xf32, #tpu.memory_space<vmem>>, %arg7: memref<1x32xf32, #tpu.memory_space<vmem>>, %arg8: memref<1x32xf32, #tpu.memory_space<vmem>>, %arg9: memref<16x32xf32, #tpu.memory_space<vmem>>, %arg10: memref<16x32xf32, #tpu.memory_space<vmem>>, %arg11: memref<16x32xf32, #tpu.memory_space<vmem>>) attributes {dimension_semantics = [#tpu.dimension_semantics<parallel>, #tpu.dimension_semantics<parallel>], iteration_bounds = array<i64: 1, 1>, scalar_prefetch = 0 : i64, scratch_operands = 0 : i64, tpu.core_type = #tpu.core_type<tc>, window_params = [{transform_indices = @transform_0, window_bounds = array<i64: 16, 32>}, {transform_indices = @transform_1, window_bounds = array<i64: 32, 32>}, {transform_indices = @transform_2, window_bounds = array<i64: 32, 32>}, {transform_indices = @transform_3, window_bounds = array<i64: 32, 32>}, {transform_indices = @transform_4, window_bounds = array<i64: 1, 32>}, {transform_indices = @transform_5, window_bounds = array<i64: 1, 32>}, {transform_indices = @transform_6, window_bounds = array<i64: 1, 32>}, {transform_indices = @transform_7, window_bounds = array<i64: 16, 32>}, {transform_indices = @transform_8, window_bounds = array<i64: 16, 32>}, {transform_indices = @transform_9, window_bounds = array<i64: 16, 32>}]} {
    %c0 = arith.constant 0 : index
    %c0_0 = arith.constant 0 : index
    %0 = vector.load %arg2[%c0, %c0_0] : memref<16x32xf32, #tpu.memory_space<vmem>>, vector<16x32xf32>
    %1 = arith.truncf %0 : vector<16x32xf32> to vector<16x32xbf16>
    %c0_1 = arith.constant 0 : index
    %c0_2 = arith.constant 0 : index
    %2 = vector.load %arg3[%c0_1, %c0_2] : memref<32x32xbf16, #tpu.memory_space<vmem>>, vector<32x32xbf16>
    %cst = arith.constant dense<0.000000e+00> : vector<16x32xf32>
    %3 = tpu.matmul %1, %2, %cst {dimension_numbers = #tpu.dot_dimension_numbers<[1], [0], [0], [1], [0, 0, 1, 1], [], []>} : vector<16x32xbf16>, vector<32x32xbf16>, vector<16x32xf32> -> vector<16x32xf32>
    %c0_3 = arith.constant 0 : index
    %c0_4 = arith.constant 0 : index
    %4 = vector.load %arg6[%c0_3, %c0_4] : memref<1x32xf32, #tpu.memory_space<vmem>>, vector<1x32xf32>
    %5 = vector.broadcast %4 : vector<1x32xf32> to vector<16x32xf32>
    %6 = arith.addf %3, %5 : vector<16x32xf32>
    %c0_5 = arith.constant 0 : index
    %c0_6 = arith.constant 0 : index
    %7 = vector.load %arg9[%c0_5, %c0_6] : memref<16x32xf32, #tpu.memory_space<vmem>>, vector<16x32xf32>
    tpu.vector_store %arg9[%c0_5, %c0_6], %6 {strides = array<i32>} : memref<16x32xf32, #tpu.memory_space<vmem>>, vector<16x32xf32>,
    %c0_7 = arith.constant 0 : index
    %c0_8 = arith.constant 0 : index
    %8 = vector.load %arg4[%c0_7, %c0_8] : memref<32x32xbf16, #tpu.memory_space<vmem>>, vector<32x32xbf16>
    %cst_9 = arith.constant dense<0.000000e+00> : vector<16x32xf32>
    %9 = tpu.matmul %1, %8, %cst_9 {dimension_numbers = #tpu.dot_dimension_numbers<[1], [0], [0], [1], [0, 0, 1, 1], [], []>} : vector<16x32xbf16>, vector<32x32xbf16>, vector<16x32xf32> -> vector<16x32xf32>
    %c0_10 = arith.constant 0 : index
    %c0_11 = arith.constant 0 : index
    %10 = vector.load %arg7[%c0_10, %c0_11] : memref<1x32xf32, #tpu.memory_space<vmem>>, vector<1x32xf32>
    %11 = vector.broadcast %10 : vector<1x32xf32> to vector<16x32xf32>
    %12 = arith.addf %9, %11 : vector<16x32xf32>
    %c0_12 = arith.constant 0 : index
    %c0_13 = arith.constant 0 : index
    %13 = vector.load %arg10[%c0_12, %c0_13] : memref<16x32xf32, #tpu.memory_space<vmem>>, vector<16x32xf32>
    tpu.vector_store %arg10[%c0_12, %c0_13], %12 {strides = array<i32>} : memref<16x32xf32, #tpu.memory_space<vmem>>, vector<16x32xf32>,
    %c0_14 = arith.constant 0 : index
    %c0_15 = arith.constant 0 : index
    %14 = vector.load %arg5[%c0_14, %c0_15] : memref<32x32xbf16, #tpu.memory_space<vmem>>, vector<32x32xbf16>
    %cst_16 = arith.constant dense<0.000000e+00> : vector<16x32xf32>
    %15 = tpu.matmul %1, %14, %cst_16 {dimension_numbers = #tpu.dot_dimension_numbers<[1], [0], [0], [1], [0, 0, 1, 1], [], []>} : vector<16x32xbf16>, vector<32x32xbf16>, vector<16x32xf32> -> vector<16x32xf32>
    %c0_17 = arith.constant 0 : index
    %c0_18 = arith.constant 0 : index
    %16 = vector.load %arg8[%c0_17, %c0_18] : memref<1x32xf32, #tpu.memory_space<vmem>>, vector<1x32xf32>
    %17 = vector.broadcast %16 : vector<1x32xf32> to vector<16x32xf32>
    %18 = arith.addf %15, %17 : vector<16x32xf32>
    %c0_19 = arith.constant 0 : index
    %c0_20 = arith.constant 0 : index
    %19 = vector.load %arg11[%c0_19, %c0_20] : memref<16x32xf32, #tpu.memory_space<vmem>>, vector<16x32xf32>
    tpu.vector_store %arg11[%c0_19, %c0_20], %18 {strides = array<i32>} : memref<16x32xf32, #tpu.memory_space<vmem>>, vector<16x32xf32>,
    return
  }
  func.func @transform_0(%arg0: i32, %arg1: i32) -> (i32, i32) {
    %c0_i32 = arith.constant 0 : i32
    %c0_i32_0 = arith.constant 0 : i32
    return %arg0, %c0_i32 : i32, i32
  }
  func.func @transform_1(%arg0: i32, %arg1: i32) -> (i32, i32) {
    %c0_i32 = arith.constant 0 : i32
    %c0_i32_0 = arith.constant 0 : i32
    return %c0_i32, %arg1 : i32, i32
  }
  func.func @transform_2(%arg0: i32, %arg1: i32) -> (i32, i32) {
    %c0_i32 = arith.constant 0 : i32
    %c0_i32_0 = arith.constant 0 : i32
    return %c0_i32, %arg1 : i32, i32
  }
  func.func @transform_3(%arg0: i32, %arg1: i32) -> (i32, i32) {
    %c0_i32 = arith.constant 0 : i32
    %c0_i32_0 = arith.constant 0 : i32
    return %c0_i32, %arg1 : i32, i32
  }
  func.func @transform_4(%arg0: i32, %arg1: i32) -> (i32, i32) {
    %c0_i32 = arith.constant 0 : i32
    %c0_i32_0 = arith.constant 0 : i32
    return %c0_i32, %arg1 : i32, i32
  }
  func.func @transform_5(%arg0: i32, %arg1: i32) -> (i32, i32) {
    %c0_i32 = arith.constant 0 : i32
    %c0_i32_0 = arith.constant 0 : i32
    return %c0_i32, %arg1 : i32, i32
  }
  func.func @transform_6(%arg0: i32, %arg1: i32) -> (i32, i32) {
    %c0_i32 = arith.constant 0 : i32
    %c0_i32_0 = arith.constant 0 : i32
    return %c0_i32, %arg1 : i32, i32
  }
  func.func @transform_7(%arg0: i32, %arg1: i32) -> (i32, i32) {
    %c0_i32 = arith.constant 0 : i32
    return %arg0, %arg1 : i32, i32
  }
  func.func @transform_8(%arg0: i32, %arg1: i32) -> (i32, i32) {
    %c0_i32 = arith.constant 0 : i32
    return %arg0, %arg1 : i32, i32
  }
  func.func @transform_9(%arg0: i32, %arg1: i32) -> (i32, i32) {
    %c0_i32 = arith.constant 0 : i32
    return %arg0, %arg1 : i32, i32
  }
}

</mosaic_0001>

<bundles_post_ra>
// kernel: tpu_custom_call.1
= control target key start
LH: loop header
LB: loop body
LE: loop exit
PB: predicated region body
PF: predicated region fallthrough
CT: control target
= control target key end

     0   :  { %15 = vsyncpa [#allocation3], 0  ;;  %s773_s0 = inlined_call_operand.hbm [shape: f32[16,32], index: 0, kind: input, shape index: {}]   ;;  %s774_s1 = inlined_call_operand.hbm [shape: bf16[32,32], index: 1, kind: input, shape index: {}]   ;;  %s775_s2 = inlined_call_operand.hbm [shape: bf16[32,32], index: 2, kind: input, shape index: {}]   ;;  %s776_s3 = inlined_call_operand.hbm [shape: bf16[32,32], index: 3, kind: input, shape index: {}]   ;;  %s777_s4 = inlined_call_operand.vmem [shape: f32[1,32], index: 4, kind: input, shape index: {}]   ;;  %s778_s5 = inlined_call_operand.vmem [shape: f32[1,32], index: 5, kind: input, shape index: {}]   ;;  %s779_s6 = inlined_call_operand.vmem [shape: f32[1,32], index: 6, kind: input, shape index: {}]   ;;  %s780_s7 = inlined_call_operand.hbm [shape: f32[16,32], index: 7, kind: output, shape index: {0}]   ;;  %s781_s8 = inlined_call_operand.hbm [shape: f32[16,32], index: 8, kind: output, shape index: {1}]   ;;  %s782_s9 = inlined_call_operand.hbm [shape: f32[16,32], index: 9, kind: output, shape index: {2}]  }
   0x1   :  { %16 = vsyncpa [#allocation6], 0 }
   0x2   :  { %17 = vsyncpa [#allocation9], 0 }
   0x3   :  { %18 = vsyncpa [#allocation4], 0 }
   0x4   :  { %19 = vsyncpa [#allocation12], 0  ;;  %s570_s30 = smov [#allocation5]   ;;  %s406_s13 = scalar_lea.hbm %s774_s1, 256 }
   0x5   :  { %s37_s10 = sshll.u32 %s570_s30, 4  ;;  %p407_p0 = scmp.ne.s32.totalorder %s774_s1, %s406_s13  ;;  %s38_s10 = int_to_ptr.vmem [resolvable:$true] %s37_s10 }
   0x6   :  { %p410_p1 = scmp.lt.u32.totalorder %s406_s13, %s774_s1 }
   0x8   :  { %p412_p2 = pnand %p410_p1, %p407_p0 }
   0xa   :  { %415 = shalt.err (!%p412_p2)
}
   0xb   :  { %s416_s18 = scalar_lea.vmem %s38_s10, 256  ;;  %p421_p4 = scmp.lt.s32.totalorder %s38_s10, %s38_s10 }
   0xc   :  { %p417_p3 = scmp.ne.s32.totalorder %s38_s10, %s416_s18  ;;  %p422_p5 = scmp.lt.s32.totalorder %s416_s18, %s416_s18 }
   0xe   :  { %p423_p6 = por %p422_p5, %p421_p4 }
  0x10   :  { %p424_p7 = pnand %p423_p6, %p417_p3 }
  0x12   :  { %427 = shalt.err (!%p424_p7)
}
  0x13   :  { %s571_s19 = smov 64   ;;  %s572_s20 = smov 4  }
  0x14   :  { %43 = dma.hbm_to_vmem [thread:$0]  %s774_s1, 256, %s38_s10, [#allocation6], %s571_s19, %s571_s19, %s572_s20  }
  0x15   :  { %s573_s23 = smov [#allocation2]   ;;  %s428_s27 = scalar_lea.hbm %s773_s0, 256 }
  0x16   :  { %s25_s24 = sshll.u32 %s573_s23, 4  ;;  %p429_p8 = scmp.ne.s32.totalorder %s773_s0, %s428_s27  ;;  %s26_s24 = int_to_ptr.vmem [resolvable:$true] %s25_s24 }
  0x17   :  { %p432_p9 = scmp.lt.u32.totalorder %s428_s27, %s773_s0 }
  0x19   :  { %p434_p10 = pnand %p432_p9, %p429_p8 }
  0x1b   :  { %437 = shalt.err (!%p434_p10)
}
  0x1c   :  { %s438_s12 = scalar_lea.vmem %s26_s24, 256  ;;  %p443_p12 = scmp.lt.s32.totalorder %s26_s24, %s26_s24 }
  0x1d   :  { %p439_p11 = scmp.ne.s32.totalorder %s26_s24, %s438_s12  ;;  %p444_p13 = scmp.lt.s32.totalorder %s438_s12, %s438_s12 }
  0x1f   :  { %p445_p0 = por %p444_p13, %p443_p12 }
  0x21   :  { %p446_p1 = pnand %p445_p0, %p439_p11 }
  0x23   :  { %449 = shalt.err (!%p446_p1)
}
  0x24   :  { %s574_s1 = smov 128   ;;  %s575_s10 = smov 8  }
  0x25   :  { %31 = dma.hbm_to_vmem [thread:$0]  %s773_s0, 256, %s26_s24, [#allocation3], %s574_s1, %s574_s1, %s575_s10  }
  0x26   :  { %s576_s15 = smov [#allocation7]   ;;  %s577_s17 = smov [#allocation8]  }
  0x27   :  { %s49_s16 = sshll.u32 %s576_s15, 4  ;;  %s61_s18 = sshll.u32 %s577_s17, 4  ;;  %s50_s16 = int_to_ptr.vmem [resolvable:$true] %s49_s16  ;;  %s663_s18 = int_to_ptr.vmem [resolvable:$true] %s61_s18 }
  0x28   :  { %s450_s23 = scalar_lea.hbm %s775_s2, 256 }
  0x29   :  { %p451_p2 = scmp.ne.s32.totalorder %s775_s2, %s450_s23  ;;  %p454_p3 = scmp.lt.u32.totalorder %s450_s23, %s775_s2 }
  0x2b   :  { %p456_p4 = pnand %p454_p3, %p451_p2 }
  0x2d   :  { %459 = shalt.err (!%p456_p4)
}
  0x2e   :  { %s460_s0 = scalar_lea.vmem %s50_s16, 256  ;;  %p465_p6 = scmp.lt.s32.totalorder %s50_s16, %s50_s16 }
  0x2f   :  { %p461_p5 = scmp.ne.s32.totalorder %s50_s16, %s460_s0  ;;  %p466_p7 = scmp.lt.s32.totalorder %s460_s0, %s460_s0 }
  0x31   :  { %p467_p8 = por %p466_p7, %p465_p6 }
  0x33   :  { %p468_p9 = pnand %p467_p8, %p461_p5 }
  0x35   :  { %471 = shalt.err (!%p468_p9)
}
  0x36   :  { %55 = dma.hbm_to_vmem [thread:$0]  %s775_s2, 256, %s50_s16, [#allocation6], %s571_s19, %s571_s19, %s572_s20  }
  0x37   :  { %s472_s12 = scalar_lea.hbm %s776_s3, 256 }
  0x38   :  { %p473_p10 = scmp.ne.s32.totalorder %s776_s3, %s472_s12  ;;  %p476_p11 = scmp.lt.u32.totalorder %s472_s12, %s776_s3 }
  0x3a   :  { %p478_p12 = pnand %p476_p11, %p473_p10 }
  0x3c   :  { %481 = shalt.err (!%p478_p12)
}
  0x3d   :  { %s482_s21 = scalar_lea.vmem %s663_s18, 256  ;;  %p487_p0 = scmp.lt.s32.totalorder %s663_s18, %s663_s18 }
  0x3e   :  { %p483_p13 = scmp.ne.s32.totalorder %s663_s18, %s482_s21  ;;  %p488_p1 = scmp.lt.s32.totalorder %s482_s21, %s482_s21 }
  0x40   :  { %p489_p2 = por %p488_p1, %p487_p0 }
  0x42   :  { %p490_p3 = pnand %p489_p2, %p483_p13 }
  0x44   :  { %493 = shalt.err (!%p490_p3)
}
  0x45   :  { %67 = dma.hbm_to_vmem [thread:$0]  %s776_s3, 256, %s663_s18, [#allocation9], %s571_s19, %s571_s19, %s572_s20  }
  0x46   :  { %560 = dma.done.wait [#allocation3], 256  }
  0x47   :  { %561 = vsyncadd [#allocation3], 4294967040 }
  0x48   :  { %562 = dma.done.wait [#allocation6], 512  }
  0x49   :  { %563 = vsyncadd [#allocation6], 4294966784 }
  0x4a   :  { %564 = dma.done.wait [#allocation9], 256  }
  0x4b   :  { %565 = vsyncadd [#allocation9], 4294967040  ;;  %v578_v0 = vmov 0.0   ;;  %vm579_vm0 = vmmov 0   ;;  %v400_v1 = vld [vmem:[#allocation5] sm:$0xff]   ;;  %v401_v2 = vld [vmem:[#allocation5 + $0x8] sm:$0xff]  }
  0x4c   :  { %363 = vmatprep.subr.bf16.mxu0 %v578_v0  ;;  %371 = vmatprep.subr.bf16.mxu1 %v578_v0  ;;  %v402_v3 = vld [vmem:[#allocation7] sm:$0xff]   ;;  %v88_v5 = vld [vmem:[#allocation2 + $0x8] sm:$0xff]  ;;  %vm113_vm1 = vcmask 261120   ;;  %v403_v8 = vld [vmem:[#allocation8] sm:$0xff]   ;;  %s580_s22 = smov [#allocation10]   ;;  %s581_s25 = smov [#allocation11]  }
  0x4d   :  { %367 = vmatprep.mubr.msk.bf16.mxu0 %vm579_vm0, %v578_v0  ;;  %375 = vmatprep.mubr.msk.bf16.mxu1 %vm579_vm0, %v578_v0  ;;  %v87_v4 = vld [vmem:[#allocation2] sm:$0xff]  ;;  %v404_v7 = vld [vmem:[#allocation7 + $0x8] sm:$0xff]   ;;  %v405_v9 = vld [vmem:[#allocation8 + $0x8] sm:$0xff]   ;;  %s297_s23 = sshll.u32 %s580_s22, 4  ;;  %s309_s26 = sshll.u32 %s581_s25, 4  ;;  %s298_s23 = int_to_ptr.vmem [resolvable:$true] %s297_s23  ;;  %s718_s26 = int_to_ptr.vmem [resolvable:$true] %s309_s26 }
  0x4e   :  { %364 = vmatpush3.bf16.msra.mxu0 %v400_v1  ;;  %372 = vmatpush3.bf16.msra.mxu1 %v402_v3  ;;  %v89_v6 = vpack.c.bf16 %v88_v5, %v87_v4  ;;  %v342_v10 = vld [vmem:[%s777_s4] ss:$0 sm:$0xff]  ;;  %s494_s27 = scalar_lea.vmem %s298_s23, 256  ;;  %p499_p5 = scmp.lt.s32.totalorder %s298_s23, %s298_s23 }
  0x4f   :  { %365 = vmatprep.subr.bf16.mxu0 %v578_v0  ;;  %373 = vmatprep.subr.bf16.mxu1 %v578_v0  ;;  %v346_v12 = vld [vmem:[%s778_s5] ss:$0 sm:$0xff]  ;;  %p495_p4 = scmp.ne.s32.totalorder %s298_s23, %s494_s27  ;;  %p500_p6 = scmp.lt.s32.totalorder %s494_s27, %s494_s27 }
  0x50   :  { %v350_v24 = vld [vmem:[%s779_s6] ss:$0 sm:$0xff] }
  0x51   :  { %p501_p7 = por %p500_p6, %p499_p5 }
  0x52   :  { %366 = vmatpush3.bf16.msra.mxu0 %v401_v2  ;;  %374 = vmatpush3.bf16.msra.mxu1 %v404_v7 }
  0x53   :  { %379 = vmatprep.subr.bf16.mxu0 %v578_v0  ;;  %p502_p8 = pnand %p501_p7, %p495_p4 }
  0x55   :  { %368 = vmatmul.mubr.msk.bf16.vlgmr.msra.gmra.mrb[0].mxu0 %vm113_vm1, %v89_v6  ;;  %376 = vmatmul.mubr.msk.bf16.vlgmr.msra.gmra.mrb[0].mxu1 %vm113_vm1, %v89_v6 }
  0x56   :  { %380 = vmatpush3.bf16.msra.mxu0 %v403_v8  ;;  %383 = vmatprep.mubr.msk.bf16.mxu0 %vm579_vm0, %v578_v0 }
  0x57   :  { %381 = vmatprep.subr.bf16.mxu0 %v578_v0 }
  0x5a   :  { %382 = vmatpush3.bf16.msra.mxu0 %v405_v9 }
  0x5d   :  { %384 = vmatmul.mubr.msk.bf16.vlgmr.msra.gmra.mrb[4].mxu0 %vm113_vm1, %v89_v6 }
 0x128   :  { %v151_v11 = vpop.f32.mrb[0].mxu0  ;;  %v217_v16 = vpop.f32.mrb[0].mxu1 }
 0x129   :  { %v152_v13 = vadd.f32 %v342_v10, %v151_v11  ;;  %v369_v14 = vpop.f32.mrb[1].mxu0  ;;  %v218_v19 = vadd.f32 %v346_v12, %v217_v16  ;;  %v377_v20 = vpop.f32.mrb[1].mxu1 }
 0x12a   :  { %v154_v15 = vpop.f32.mrb[2].mxu0  ;;  %v220_v21 = vpop.f32.mrb[2].mxu1 }
 0x12b   :  { %158 = vst.msk [vmem:[#allocation10] sm:$0xff] %vm113_vm1, %v152_v13  ;;  %v155_v17 = vadd.f32 %v342_v10, %v154_v15  ;;  %v370_v18 = vpop.f32.mrb[3].mxu0  ;;  %224 = vst.msk [vmem:[#allocation11] sm:$0xff] %vm113_vm1, %v218_v19  ;;  %v221_v22 = vadd.f32 %v346_v12, %v220_v21  ;;  %v378_v23 = vpop.f32.mrb[3].mxu1 }
 0x12d   :  { %159 = vst.msk [vmem:[#allocation10 + $0x8] sm:$0xff] %vm113_vm1, %v155_v17 }
 0x12e   :  { %505 = shalt.err (!%p502_p8)
}
 0x12f   :  { %s506_s24 = scalar_lea.hbm %s780_s7, 256 }
 0x130   :  { %p507_p9 = scmp.ne.s32.totalorder %s780_s7, %s506_s24  ;;  %p510_p10 = scmp.lt.u32.totalorder %s506_s24, %s780_s7 }
 0x132   :  { %p512_p11 = pnand %p510_p10, %p507_p9 }
 0x134   :  { %515 = shalt.err (!%p512_p11)
}
 0x135   :  { %303 = dma.vmem_to_hbm [thread:$0]  %s298_s23, 256, %s780_s7, [#allocation4], %s574_s1, %s574_s1, %s575_s10   ;;  %225 = vst.msk [vmem:[#allocation11 + $0x8] sm:$0xff] %vm113_vm1, %v221_v22  ;;  %v283_v25 = vpop.f32.mrb[4].mxu0 }
 0x136   :  { %s582_s14 = smov [#allocation13]   ;;  %s516_s17 = scalar_lea.vmem %s718_s26, 256 }
 0x137   :  { %s321_s15 = sshll.u32 %s582_s14, 4  ;;  %p517_p12 = scmp.ne.s32.totalorder %s718_s26, %s516_s17  ;;  %s322_s15 = int_to_ptr.vmem [resolvable:$true] %s321_s15 }
 0x138   :  { %p521_p13 = scmp.lt.s32.totalorder %s718_s26, %s718_s26  ;;  %p522_p0 = scmp.lt.s32.totalorder %s516_s17, %s516_s17 }
 0x13a   :  { %p523_p1 = por %p522_p0, %p521_p13 }
 0x13c   :  { %p524_p2 = pnand %p523_p1, %p517_p12 }
 0x13e   :  { %527 = shalt.err (!%p524_p2)
}
 0x13f   :  { %s528_s16 = scalar_lea.hbm %s781_s8, 256 }
 0x140   :  { %p529_p3 = scmp.ne.s32.totalorder %s781_s8, %s528_s16  ;;  %p532_p4 = scmp.lt.u32.totalorder %s528_s16, %s781_s8 }
 0x142   :  { %p534_p5 = pnand %p532_p4, %p529_p3 }
 0x144   :  { %537 = shalt.err (!%p534_p5)
}
 0x145   :  { %315 = dma.vmem_to_hbm [thread:$0]  %s718_s26, 256, %s781_s8, [#allocation12], %s574_s1, %s574_s1, %s575_s10   ;;  %v284_v26 = vadd.f32 %v350_v24, %v283_v25  ;;  %v385_v27 = vpop.f32.mrb[5].mxu0 }
 0x146   :  { %v286_v28 = vpop.f32.mrb[6].mxu0  ;;  %s538_s23 = scalar_lea.vmem %s322_s15, 256  ;;  %p543_p7 = scmp.lt.s32.totalorder %s322_s15, %s322_s15 }
 0x147   :  { %290 = vst.msk [vmem:[#allocation13] sm:$0xff] %vm113_vm1, %v284_v26  ;;  %v287_v29 = vadd.f32 %v350_v24, %v286_v28  ;;  %v386_v30 = vpop.f32.mrb[7].mxu0  ;;  %p539_p6 = scmp.ne.s32.totalorder %s322_s15, %s538_s23  ;;  %p544_p8 = scmp.lt.s32.totalorder %s538_s23, %s538_s23 }
 0x149   :  { %291 = vst.msk [vmem:[#allocation13 + $0x8] sm:$0xff] %vm113_vm1, %v287_v29  ;;  %p545_p9 = por %p544_p8, %p543_p7 }
 0x14b   :  { %p546_p10 = pnand %p545_p9, %p539_p6 }
 0x14d   :  { %549 = shalt.err (!%p546_p10)
}
 0x14e   :  { %s550_s8 = scalar_lea.hbm %s782_s9, 256 }
 0x14f   :  { %p551_p11 = scmp.ne.s32.totalorder %s782_s9, %s550_s8  ;;  %p554_p12 = scmp.lt.u32.totalorder %s550_s8, %s782_s9 }
 0x151   :  { %p556_p13 = pnand %p554_p12, %p551_p11 }
 0x153   :  { %559 = shalt.err (!%p556_p13)
}
 0x154   :  { %327 = dma.vmem_to_hbm [thread:$0]  %s322_s15, 256, %s782_s9, [#allocation12], %s574_s1, %s574_s1, %s575_s10  }
 0x155   :  { %566 = dma.done.wait [#allocation4], 256  }
 0x156   :  { %567 = vsyncadd [#allocation4], 4294967040 }
 0x157   :  { %568 = dma.done.wait [#allocation12], 512  }
 0x158   :  { %569 = vsyncadd [#allocation12], 4294966784 }
 0x159   :  { %337 = vsyncpa [#allocation3], 1 }
 0x15a   :  { %338 = vsyncpa [#allocation6], 1 }
 0x15b   :  { %339 = vsyncpa [#allocation9], 1 }
 0x15c   :  { %340 = vsyncpa [#allocation4], 1 }
 0x15d   :  { %341 = vsyncpa [#allocation12], 1 }

</bundles_post_ra>
